<compile_context>
chip_gen: v5e
topology: v5e:2x2
jax: 0.10.0
libtpu: 0.0.40
codegen_flags: <defaults>
</compile_context>

<pallas_src>
import numpy as np
import jax
import jax.numpy as jnp
from jax.experimental import pallas as pl
from jax.experimental.pallas import tpu as pltpu

_BN_EPS = 1e-5


# ------------------------------ Pallas kernel --------------------------------

def _spectra_kernel(x_ref, w_in_ref, b_in_ref, a_in_ref,
                    w_mid_ref, b_mid_ref, a_mid_ref,
                    w_out_ref, b_out_ref,
                    kf_re_ref, kf_im_ref, ki_re_ref, ki_im_ref,
                    o_ref):
    """Whole Spectra forward on one VMEM-resident block.

    rows = (batch, channel)  [block-diagonal 1x1-conv weights]
    lanes = flattened spatial (h*W + w) or spectral (u*Wf + v) coordinates
    -> every op is a plain 2-D f32 MXU matmul or a lane-broadcast VPU op.
    """
    f32 = jnp.float32

    def prelu(t, alpha):
        # max/min form avoids an extra select + broadcast in the epilogue
        return jnp.maximum(t, 0.0) + jnp.minimum(t, 0.0) * alpha

    # inConv: 1x1 conv (BN folded) + PReLU.  Result is also the skip branch.
    y = jnp.dot(w_in_ref[...], x_ref[...], preferred_element_type=f32)
    y = prelu(y + b_in_ref[...], a_in_ref[...])                 # (N*Cmid, H*W)

    # rfft2 as one (H*W -> H*Wf) real/imag DFT matmul pair.
    z_re = jnp.dot(y, kf_re_ref[...], preferred_element_type=f32)
    z_im = jnp.dot(y, kf_im_ref[...], preferred_element_type=f32)

    # midConv: identical per-channel 1x1 (BN folded) + PReLU on the real and
    # imaginary halves (== torch.cat((re, im), dim=-1) through a 1x1 conv).
    w_mid = w_mid_ref[...]
    b_mid = b_mid_ref[...]
    a_mid = a_mid_ref[...]
    m_re = prelu(jnp.dot(w_mid, z_re, preferred_element_type=f32) + b_mid, a_mid)
    m_im = prelu(jnp.dot(w_mid, z_im, preferred_element_type=f32) + b_mid, a_mid)

    # irfft2 as one (H*Wf -> H*W) matmul pair, then the skip connection.
    spect = (jnp.dot(m_re, ki_re_ref[...], preferred_element_type=f32)
             + jnp.dot(m_im, ki_im_ref[...], preferred_element_type=f32))
    s = spect + y

    # outConv: plain 1x1 conv; lane-dense (H*W) store.
    o_ref[...] = jnp.dot(w_out_ref[...], s, preferred_element_type=f32) + b_out_ref[...]


# ------------------------- host-side parameter prep --------------------------

def _fold_bn(w, b, bn, eps=_BN_EPS):
    """Fold inference-mode BatchNorm into a 1x1-conv weight (Cout, Cin) / bias."""
    scale = bn['gamma'] / jnp.sqrt(bn['var'] + eps)
    shift = bn['beta'] - bn['mean'] * scale
    return w * scale[:, None], b * scale + shift


def _blockdiag(w, n):
    """(Cout, Cin) -> (n*Cout, n*Cin) block-diagonal weight: kron(I_n, w)."""
    return jnp.kron(jnp.eye(n, dtype=w.dtype), w)


def _colvec(v, n):
    """(C,) -> (n*C, 1) per-row vector matching the (batch, channel) row order."""
    return jnp.tile(v, n).reshape(-1, 1)


def _dft_matrices(H, W):
    """Real/imag 2-D DFT matrices so that, for a real HxW image y flattened
    row-major:  rfft2(y) = y @ (kf_re + i*kf_im)   (cols = u*Wf + v)
                irfft2(z) = z_re @ ki_re + z_im @ ki_im
    using the standard Hermitian-extension convention along the last axis.
    Built once on the host in float64 (H, W are small)."""
    Wf = W // 2 + 1
    hh = np.outer(np.arange(H), np.arange(H))                    # [u, h] == [p, u]
    fh = np.exp(-2j * np.pi * hh / H)                            # forward FFT over H
    wv = np.outer(np.arange(W), np.arange(Wf))                   # [w, v]
    fw = np.exp(-2j * np.pi * wv / W)                            # forward rFFT over W
    kf = np.einsum('uh,wv->hwuv', fh, fw).reshape(H * W, H * Wf)

    ih = np.exp(+2j * np.pi * hh / H) / H                        # inverse FFT over H [p, u]
    cv = np.full((Wf,), 2.0)
    cv[0] = 1.0
    if W % 2 == 0:
        cv[-1] = 1.0
    # (irfft infers an output width of 2*(Wf-1); correct for even W, as in torch.)
    ang = 2.0 * np.pi * np.outer(np.arange(Wf), np.arange(W)) / W   # [v, w]
    iw_re = (cv[:, None] / W) * np.cos(ang)
    iw_im = -(cv[:, None] / W) * np.sin(ang)
    ih_re, ih_im = np.real(ih), np.imag(ih)
    ki_re = (np.einsum('pu,vw->uvpw', ih_re, iw_re)
             + np.einsum('pu,vw->uvpw', ih_im, iw_im)).reshape(H * Wf, H * W)
    ki_im = (np.einsum('pu,vw->uvpw', ih_re, iw_im)
             - np.einsum('pu,vw->uvpw', ih_im, iw_re)).reshape(H * Wf, H * W)
    f32 = np.float32
    return (jnp.asarray(np.real(kf), f32), jnp.asarray(np.imag(kf), f32),
            jnp.asarray(ki_re, f32), jnp.asarray(ki_im, f32))


# ------------------------------ module forward --------------------------------

def spectra_forward(x, params):
    """x: (N, C, H, W) float32 (NCHW, as in the PyTorch module)."""
    # TODO(synk): the dense-DFT formulation is intended for small spatial sizes
    # (H, W <= ~32); very large H*W would need an FFT outside the kernel instead.
    N, C, H, W = x.shape
    HW = H * W

    w_in, b_in = _fold_bn(params['w_in'], params['b_in'], params['bn_in'])
    w_mid, b_mid = _fold_bn(params['w_mid'], params['b_mid'], params['bn_mid'])

    operands = (
        x.reshape(N * C, HW).astype(jnp.float32),
        _blockdiag(w_in, N), _colvec(b_in, N), _colvec(params['alpha_in'], N),
        _blockdiag(w_mid, N), _colvec(b_mid, N), _colvec(params['alpha_mid'], N),
        _blockdiag(params['w_out'], N), _colvec(params['b_out'], N),
        *_dft_matrices(H, W),
    )

    vmem = pl.BlockSpec(memory_space=pltpu.MemorySpace.VMEM)
    out2 = pl.pallas_call(
        _spectra_kernel,
        out_shape=jax.ShapeDtypeStruct((N * C, HW), jnp.float32),
        in_specs=[vmem] * len(operands),
        out_specs=vmem,
    )(*operands)
    return out2.reshape(N, C, H, W)


# ------------------------------ pure-JAX reference ----------------------------

def spectra_reference(x, params):
    """Reference with identical semantics, using jnp.fft (for validation only)."""
    def conv1x1(t, w, b):
        return jnp.einsum('oc,nchw->nohw', w, t) + b[None, :, None, None]

    def bn(t, p):
        s = p['gamma'] / jnp.sqrt(p['var'] + _BN_EPS)
        return t * s[None, :, None, None] + (p['beta'] - p['mean'] * s)[None, :, None, None]

    def prelu(t, a):
        return jnp.where(t >= 0, t, t * a[None, :, None, None])

    y = prelu(bn(conv1x1(x, params['w_in'], params['b_in']), params['bn_in']),
              params['alpha_in'])
    skip = y
    z = jnp.fft.rfft2(y, axes=(-2, -1))
    cat = jnp.concatenate([jnp.real(z), jnp.imag(z)], axis=-1)
    m = prelu(bn(conv1x1(cat, params['w_mid'], params['b_mid']), params['bn_mid']),
              params['alpha_mid'])
    half = m.shape[-1] // 2
    zc = m[..., :half] + 1j * m[..., half:]
    spect = jnp.fft.irfft2(zc, axes=(-2, -1))
    return conv1x1(spect + skip, params['w_out'], params['b_out'])


# ------------------------------ deterministic init ----------------------------

def init_spectra_params(key, in_depth):
    inter = in_depth // 2 if in_depth >= 2 else in_depth
    ks = jax.random.split(key, 3)

    def conv(k, cout, cin):
        kw, kb = jax.random.split(k)
        w = jax.random.normal(kw, (cout, cin), jnp.float32) / np.sqrt(cin)
        b = 0.01 * jax.random.normal(kb, (cout,), jnp.float32)
        return w, b

    def bn(c):  # fresh nn.BatchNorm2d (inference / running stats)
        return {'gamma': jnp.ones((c,), jnp.float32),
                'beta': jnp.zeros((c,), jnp.float32),
                'mean': jnp.zeros((c,), jnp.float32),
                'var': jnp.ones((c,), jnp.float32)}

    w_in, b_in = conv(ks[0], inter, in_depth)
    w_mid, b_mid = conv(ks[1], inter, inter)
    w_out, b_out = conv(ks[2], in_depth, inter)
    return {
        'w_in': w_in, 'b_in': b_in, 'bn_in': bn(inter),
        'alpha_in': jnp.full((inter,), 0.25, jnp.float32),
        'w_mid': w_mid, 'b_mid': b_mid, 'bn_mid': bn(inter),
        'alpha_mid': jnp.full((inter,), 0.25, jnp.float32),
        'w_out': w_out, 'b_out': b_out,
    }


# ------------------------------------ main -------------------------------------

if __name__ == "__main__":
    N, C, H, W = 2, 8, 16, 16                      # small NCHW input
    kp, kx = jax.random.split(jax.random.PRNGKey(0))
    params = init_spectra_params(kp, C)
    x = jax.random.normal(kx, (N, C, H, W), jnp.float32)

    out = jax.jit(spectra_forward)(x, params)
    jax.block_until_ready(out)

    assert out.shape == (N, C, H, W)
    assert bool(jnp.all(jnp.isfinite(out)))

    # Validate against the jnp.fft reference.  Tolerance is loose enough to
    # absorb TPU default (possibly bf16-pass) matmul precision, but tight
    # enough to catch any semantic/layout/DFT-convention error.
    ref = spectra_reference(x, params)
    err = float(jnp.max(jnp.abs(out - ref)))
    assert err < 1e-1, f"mismatch vs jnp.fft reference: max abs err = {err}"

    print("KERNEL_OK")
</pallas_src>

<mosaic_0001>
module attributes {stable_mosaic.version = 11 : i64} {
  func.func @_spectra_kernel(%arg0: memref<16x256xf32, #tpu.memory_space<vmem>>, %arg1: memref<8x16xf32, #tpu.memory_space<vmem>>, %arg2: memref<8x1xf32, #tpu.memory_space<vmem>>, %arg3: memref<8x1xf32, #tpu.memory_space<vmem>>, %arg4: memref<8x8xf32, #tpu.memory_space<vmem>>, %arg5: memref<8x1xf32, #tpu.memory_space<vmem>>, %arg6: memref<8x1xf32, #tpu.memory_space<vmem>>, %arg7: memref<16x8xf32, #tpu.memory_space<vmem>>, %arg8: memref<16x1xf32, #tpu.memory_space<vmem>>, %arg9: memref<256x144xf32, #tpu.memory_space<vmem>>, %arg10: memref<256x144xf32, #tpu.memory_space<vmem>>, %arg11: memref<144x256xf32, #tpu.memory_space<vmem>>, %arg12: memref<144x256xf32, #tpu.memory_space<vmem>>, %arg13: memref<16x256xf32, #tpu.memory_space<vmem>>) attributes {dimension_semantics = [], scalar_prefetch = 0 : i64, scratch_operands = 0 : i64, tpu.core_type = #tpu.core_type<tc>} {
    %c0 = arith.constant 0 : index
    %c0_0 = arith.constant 0 : index
    %0 = vector.load %arg1[%c0, %c0_0] : memref<8x16xf32, #tpu.memory_space<vmem>>, vector<8x16xf32>
    %c0_1 = arith.constant 0 : index
    %c0_2 = arith.constant 0 : index
    %1 = vector.load %arg0[%c0_1, %c0_2] : memref<16x256xf32, #tpu.memory_space<vmem>>, vector<16x256xf32>
    %cst = arith.constant dense<0.000000e+00> : vector<8x256xf32>
    %2 = tpu.matmul %0, %1, %cst {dimension_numbers = #tpu.dot_dimension_numbers<[1], [0], [0], [1], [0, 0, 1, 1], [], []>} : vector<8x16xf32>, vector<16x256xf32>, vector<8x256xf32> -> vector<8x256xf32>
    %c0_3 = arith.constant 0 : index
    %c0_4 = arith.constant 0 : index
    %3 = vector.load %arg2[%c0_3, %c0_4] : memref<8x1xf32, #tpu.memory_space<vmem>>, vector<8x1xf32>
    %4 = vector.broadcast %3 : vector<8x1xf32> to vector<8x256xf32>
    %5 = arith.addf %2, %4 : vector<8x256xf32>
    %c0_5 = arith.constant 0 : index
    %c0_6 = arith.constant 0 : index
    %6 = vector.load %arg3[%c0_5, %c0_6] : memref<8x1xf32, #tpu.memory_space<vmem>>, vector<8x1xf32>
    %cst_7 = arith.constant 0.000000e+00 : f32
    %7 = vector.broadcast %cst_7 : f32 to vector<8x256xf32>
    %8 = arith.maximumf %5, %7 : vector<8x256xf32>
    %cst_8 = arith.constant 0.000000e+00 : f32
    %9 = vector.broadcast %cst_8 : f32 to vector<8x256xf32>
    %10 = arith.minimumf %5, %9 : vector<8x256xf32>
    %11 = vector.broadcast %6 : vector<8x1xf32> to vector<8x256xf32>
    %12 = arith.mulf %10, %11 : vector<8x256xf32>
    %13 = arith.addf %8, %12 : vector<8x256xf32>
    %c0_9 = arith.constant 0 : index
    %c0_10 = arith.constant 0 : index
    %14 = vector.load %arg9[%c0_9, %c0_10] : memref<256x144xf32, #tpu.memory_space<vmem>>, vector<256x144xf32>
    %cst_11 = arith.constant dense<0.000000e+00> : vector<8x144xf32>
    %15 = tpu.matmul %13, %14, %cst_11 {dimension_numbers = #tpu.dot_dimension_numbers<[1], [0], [0], [1], [0, 0, 1, 1], [], []>} : vector<8x256xf32>, vector<256x144xf32>, vector<8x144xf32> -> vector<8x144xf32>
    %c0_12 = arith.constant 0 : index
    %c0_13 = arith.constant 0 : index
    %16 = vector.load %arg10[%c0_12, %c0_13] : memref<256x144xf32, #tpu.memory_space<vmem>>, vector<256x144xf32>
    %cst_14 = arith.constant dense<0.000000e+00> : vector<8x144xf32>
    %17 = tpu.matmul %13, %16, %cst_14 {dimension_numbers = #tpu.dot_dimension_numbers<[1], [0], [0], [1], [0, 0, 1, 1], [], []>} : vector<8x256xf32>, vector<256x144xf32>, vector<8x144xf32> -> vector<8x144xf32>
    %c0_15 = arith.constant 0 : index
    %c0_16 = arith.constant 0 : index
    %18 = vector.load %arg4[%c0_15, %c0_16] : memref<8x8xf32, #tpu.memory_space<vmem>>, vector<8x8xf32>
    %c0_17 = arith.constant 0 : index
    %c0_18 = arith.constant 0 : index
    %19 = vector.load %arg5[%c0_17, %c0_18] : memref<8x1xf32, #tpu.memory_space<vmem>>, vector<8x1xf32>
    %c0_19 = arith.constant 0 : index
    %c0_20 = arith.constant 0 : index
    %20 = vector.load %arg6[%c0_19, %c0_20] : memref<8x1xf32, #tpu.memory_space<vmem>>, vector<8x1xf32>
    %cst_21 = arith.constant dense<0.000000e+00> : vector<8x144xf32>
    %21 = tpu.matmul %18, %15, %cst_21 {dimension_numbers = #tpu.dot_dimension_numbers<[1], [0], [0], [1], [0, 0, 1, 1], [], []>} : vector<8x8xf32>, vector<8x144xf32>, vector<8x144xf32> -> vector<8x144xf32>
    %22 = vector.broadcast %19 : vector<8x1xf32> to vector<8x144xf32>
    %23 = arith.addf %21, %22 : vector<8x144xf32>
    %cst_22 = arith.constant 0.000000e+00 : f32
    %24 = vector.broadcast %cst_22 : f32 to vector<8x144xf32>
    %25 = arith.maximumf %23, %24 : vector<8x144xf32>
    %cst_23 = arith.constant 0.000000e+00 : f32
    %26 = vector.broadcast %cst_23 : f32 to vector<8x144xf32>
    %27 = arith.minimumf %23, %26 : vector<8x144xf32>
    %28 = vector.broadcast %20 : vector<8x1xf32> to vector<8x144xf32>
    %29 = arith.mulf %27, %28 : vector<8x144xf32>
    %30 = arith.addf %25, %29 : vector<8x144xf32>
    %cst_24 = arith.constant dense<0.000000e+00> : vector<8x144xf32>
    %31 = tpu.matmul %18, %17, %cst_24 {dimension_numbers = #tpu.dot_dimension_numbers<[1], [0], [0], [1], [0, 0, 1, 1], [], []>} : vector<8x8xf32>, vector<8x144xf32>, vector<8x144xf32> -> vector<8x144xf32>
    %32 = vector.broadcast %19 : vector<8x1xf32> to vector<8x144xf32>
    %33 = arith.addf %31, %32 : vector<8x144xf32>
    %cst_25 = arith.constant 0.000000e+00 : f32
    %34 = vector.broadcast %cst_25 : f32 to vector<8x144xf32>
    %35 = arith.maximumf %33, %34 : vector<8x144xf32>
    %cst_26 = arith.constant 0.000000e+00 : f32
    %36 = vector.broadcast %cst_26 : f32 to vector<8x144xf32>
    %37 = arith.minimumf %33, %36 : vector<8x144xf32>
    %38 = vector.broadcast %20 : vector<8x1xf32> to vector<8x144xf32>
    %39 = arith.mulf %37, %38 : vector<8x144xf32>
    %40 = arith.addf %35, %39 : vector<8x144xf32>
    %c0_27 = arith.constant 0 : index
    %c0_28 = arith.constant 0 : index
    %41 = vector.load %arg11[%c0_27, %c0_28] : memref<144x256xf32, #tpu.memory_space<vmem>>, vector<144x256xf32>
    %cst_29 = arith.constant dense<0.000000e+00> : vector<8x256xf32>
    %42 = tpu.matmul %30, %41, %cst_29 {dimension_numbers = #tpu.dot_dimension_numbers<[1], [0], [0], [1], [0, 0, 1, 1], [], []>} : vector<8x144xf32>, vector<144x256xf32>, vector<8x256xf32> -> vector<8x256xf32>
    %c0_30 = arith.constant 0 : index
    %c0_31 = arith.constant 0 : index
    %43 = vector.load %arg12[%c0_30, %c0_31] : memref<144x256xf32, #tpu.memory_space<vmem>>, vector<144x256xf32>
    %cst_32 = arith.constant dense<0.000000e+00> : vector<8x256xf32>
    %44 = tpu.matmul %40, %43, %cst_32 {dimension_numbers = #tpu.dot_dimension_numbers<[1], [0], [0], [1], [0, 0, 1, 1], [], []>} : vector<8x144xf32>, vector<144x256xf32>, vector<8x256xf32> -> vector<8x256xf32>
    %45 = arith.addf %42, %44 : vector<8x256xf32>
    %46 = arith.addf %45, %13 : vector<8x256xf32>
    %c0_33 = arith.constant 0 : index
    %c0_34 = arith.constant 0 : index
    %47 = vector.load %arg7[%c0_33, %c0_34] : memref<16x8xf32, #tpu.memory_space<vmem>>, vector<16x8xf32>
    %cst_35 = arith.constant dense<0.000000e+00> : vector<16x256xf32>
    %48 = tpu.matmul %47, %46, %cst_35 {dimension_numbers = #tpu.dot_dimension_numbers<[1], [0], [0], [1], [0, 0, 1, 1], [], []>} : vector<16x8xf32>, vector<8x256xf32>, vector<16x256xf32> -> vector<16x256xf32>
    %c0_36 = arith.constant 0 : index
    %c0_37 = arith.constant 0 : index
    %49 = vector.load %arg8[%c0_36, %c0_37] : memref<16x1xf32, #tpu.memory_space<vmem>>, vector<16x1xf32>
    %50 = vector.broadcast %49 : vector<16x1xf32> to vector<16x256xf32>
    %51 = arith.addf %48, %50 : vector<16x256xf32>
    %c0_38 = arith.constant 0 : index
    %c0_39 = arith.constant 0 : index
    %52 = vector.load %arg13[%c0_38, %c0_39] : memref<16x256xf32, #tpu.memory_space<vmem>>, vector<16x256xf32>
    tpu.vector_store %arg13[%c0_38, %c0_39], %51 {strides = array<i32>} : memref<16x256xf32, #tpu.memory_space<vmem>>, vector<16x256xf32>,
    return
  }
}

</mosaic_0001>

<bundles_post_ra>
// kernel: tile.48
= control target key start
LH: loop header
LB: loop body
LE: loop exit
PB: predicated region body
PF: predicated region fallthrough
CT: control target
= control target key end

     0   :  { %s22_s0 = inlined_call_operand.vmem [shape: f32[8], index: 0, kind: input, shape index: {}]   ;;  %s23_s1 = inlined_call_operand.vmem [shape: f32[2,8], index: 1, kind: output, shape index: {}]  }
   0x1   :  { %v4_v0 = vld [vmem:[%s22_s0] ss:$0 sm:$0xff] }
   0x2   :  { %5 = vst [vmem:[%s23_s1] sm:$0x3] %v4_v0 }

// kernel: tile.33
= control target key start
LH: loop header
LB: loop body
LE: loop exit
PB: predicated region body
PF: predicated region fallthrough
CT: control target
= control target key end

     0   :  { %2 = vsyncpa [#allocation1], 0  ;;  %s48_s8 = smov [#allocation0]   ;;  %s65_s0 = inlined_call_operand.hbm [shape: f32[4], index: 0, kind: input, shape index: {}]   ;;  %s66_s1 = inlined_call_operand.vmem [shape: f32[2,4], index: 1, kind: output, shape index: {}]  }
   0x1   :  { %s8_s0 = sshll.u32 %s65_s0, 4  ;;  %s10_s9 = sshll.u32 %s48_s8, 4  ;;  %s9_s0 = int_to_ptr.hbm [resolvable:$true] %s8_s0  ;;  %s11_s9 = int_to_ptr.vmem [resolvable:$true] %s10_s9 }
   0x2   :  { %13 = dma.hbm_to_vmem [thread:$0]  %s9_s0, 16, %s11_s9, [#allocation1]  }
   0x3   :  { %46 = dma.done.wait [#allocation1], 16  }
   0x4   :  { %47 = vsyncadd [#allocation1], 4294967280  ;;  %v18_v0 = vld [vmem:[#allocation0] ss:$0 sm:$0xff] }
   0x5   :  { %19 = vst [vmem:[%s66_s1] sm:$0x3] %v18_v0 }
   0x6   :  { %20 = vsyncpa [#allocation1], 1 }

// kernel: tile.28
= control target key start
LH: loop header
LB: loop body
LE: loop exit
PB: predicated region body
PF: predicated region fallthrough
CT: control target
= control target key end

     0   :  { %s22_s0 = inlined_call_operand.vmem [shape: f32[4], index: 0, kind: input, shape index: {}]   ;;  %s23_s1 = inlined_call_operand.vmem [shape: f32[2,4], index: 1, kind: output, shape index: {}]  }
   0x1   :  { %v4_v0 = vld [vmem:[%s22_s0] ss:$0 sm:$0xff] }
   0x2   :  { %5 = vst [vmem:[%s23_s1] sm:$0x3] %v4_v0 }

// kernel: tile.2
= control target key start
LH: loop header
LB: loop body
LE: loop exit
PB: predicated region body
PF: predicated region fallthrough
CT: control target
= control target key end

     0   :  { %s34_s8 = smov 125   ;;  %s35_s9 = smov 126   ;;  %vm7_vm0 = vcmask 7168   ;;  %s61_s0 = inlined_call_operand.vmem [shape: f32[2,4], index: 0, kind: input, shape index: {}]   ;;  %s62_s1 = inlined_call_operand.vmem [shape: f32[8,1], index: 1, kind: output, shape index: {}]  }
   0x1   :  { %v4_v0 = vld [vmem:[%s61_s0] sm:$0x3]  ;;  %s33_s0 = smov 127  }
   0x2   :  { %5 = vst [vmem:[#allocation0] sm:$0x3] %v4_v0 }
   0x9   :  { %v9_v1 = vld [vmem:[#allocation0] sm:$0x3]  }
   0xa   :  { %v21_v2 = vld [vmem:[#allocation0] sm:$0x3]   ;;  %10 = vrot.lane.b32.xlu0 %v9_v1, %s33_s0 }
   0xb   :  { %22 = vrot.lane.b32.xlu1 %v21_v2, %s34_s8  ;;  %v15_v3 = vld [vmem:[#allocation0] sm:$0x3]  }
   0xc   :  { %v6_v4 = vld [vmem:[#allocation0] sm:$0x3]  }
   0xd   :  { %8 = vst.msk [vmem:[%s62_s1] ss:$4 sm:$0x3] %vm7_vm0, %v6_v4  }
  0x12   :  { %16 = vrot.lane.b32.xlu0 %v15_v3, %s35_s9 }
  0x7c   :  { %v11_v5 = vpop.permute.xlu0 %10  }
  0x7d   :  { %v23_v6 = vpop.permute.xlu1 %22   ;;  %27 = vst.msk [vmem:[%s62_s1 + $0x1] ss:$4 sm:$0x3] %vm7_vm0, %v11_v5  }
  0x7e   :  { %29 = vst.msk [vmem:[%s62_s1 + $0x3] ss:$4 sm:$0x3] %vm7_vm0, %v23_v6  }
  0x84   :  { %v17_v7 = vpop.permute.xlu0 %16  }
  0x85   :  { %28 = vst.msk [vmem:[%s62_s1 + $0x2] ss:$4 sm:$0x3] %vm7_vm0, %v17_v7  }

// kernel: tile.4
= control target key start
LH: loop header
LB: loop body
LE: loop exit
PB: predicated region body
PF: predicated region fallthrough
CT: control target
= control target key end

     0   :  { %s66_s8 = smov 125   ;;  %s67_s9 = smov 123   ;;  %vm7_vm0 = vcmask 7168   ;;  %s117_s0 = inlined_call_operand.vmem [shape: f32[2,8], index: 0, kind: input, shape index: {}]   ;;  %s118_s1 = inlined_call_operand.vmem [shape: f32[16,1], index: 1, kind: output, shape index: {}]  }
   0x1   :  { %v4_v0 = vld [vmem:[%s117_s0] sm:$0x3]  ;;  %s65_s0 = smov 127   ;;  %s68_s10 = smov 126  }
   0x2   :  { %5 = vst [vmem:[#allocation0] sm:$0x3] %v4_v0  ;;  %s69_s11 = smov 124   ;;  %s70_s12 = smov 122  }
   0x3   :  { %s71_s13 = smov 121  }
   0x9   :  { %v9_v1 = vld [vmem:[#allocation0] sm:$0x3]  }
   0xa   :  { %v21_v2 = vld [vmem:[#allocation0] sm:$0x3]   ;;  %10 = vrot.lane.b32.xlu0 %v9_v1, %s65_s0 }
   0xb   :  { %22 = vrot.lane.b32.xlu1 %v21_v2, %s66_s8  ;;  %v33_v3 = vld [vmem:[#allocation0] sm:$0x3]  }
   0xc   :  { %34 = vrot.lane.b32.xlu2 %v33_v3, %s67_s9  ;;  %v15_v4 = vld [vmem:[#allocation0] sm:$0x3]  }
   0xd   :  { %v27_v5 = vld [vmem:[#allocation0] sm:$0x3]  }
   0xe   :  { %v39_v6 = vld [vmem:[#allocation0] sm:$0x3]  }
   0xf   :  { %v45_v7 = vld [vmem:[#allocation0] sm:$0x3]  }
  0x10   :  { %v6_v8 = vld [vmem:[#allocation0] sm:$0x3]  }
  0x11   :  { %8 = vst.msk [vmem:[%s118_s1] ss:$8 sm:$0x3] %vm7_vm0, %v6_v8  }
  0x12   :  { %16 = vrot.lane.b32.xlu0 %v15_v4, %s68_s10 }
  0x13   :  { %28 = vrot.lane.b32.xlu1 %v27_v5, %s69_s11 }
  0x14   :  { %40 = vrot.lane.b32.xlu2 %v39_v6, %s70_s12 }
  0x1a   :  { %46 = vrot.lane.b32.xlu0 %v45_v7, %s71_s13 }
  0x66   :  { %v35_v9 = vpop.permute.xlu2 %34  }
  0x67   :  { %55 = vst.msk [vmem:[%s118_s1 + $0x5] ss:$8 sm:$0x3] %vm7_vm0, %v35_v9  }
  0x6e   :  { %v41_v10 = vpop.permute.xlu2 %40  }
  0x6f   :  { %56 = vst.msk [vmem:[%s118_s1 + $0x6] ss:$8 sm:$0x3] %vm7_vm0, %v41_v10  }
  0x7c   :  { %v11_v11 = vpop.permute.xlu0 %10  }
  0x7d   :  { %v23_v12 = vpop.permute.xlu1 %22   ;;  %51 = vst.msk [vmem:[%s118_s1 + $0x1] ss:$8 sm:$0x3] %vm7_vm0, %v11_v11  }
  0x7e   :  { %53 = vst.msk [vmem:[%s118_s1 + $0x3] ss:$8 sm:$0x3] %vm7_vm0, %v23_v12  }
  0x84   :  { %v17_v13 = vpop.permute.xlu0 %16  }
  0x85   :  { %v29_v14 = vpop.permute.xlu1 %28   ;;  %52 = vst.msk [vmem:[%s118_s1 + $0x2] ss:$8 sm:$0x3] %vm7_vm0, %v17_v13  }
  0x86   :  { %54 = vst.msk [vmem:[%s118_s1 + $0x4] ss:$8 sm:$0x3] %vm7_vm0, %v29_v14  }
  0x8c   :  { %v47_v15 = vpop.permute.xlu0 %46  }
  0x8d   :  { %57 = vst.msk [vmem:[%s118_s1 + $0x7] ss:$8 sm:$0x3] %vm7_vm0, %v47_v15  }

// kernel: spectra_forward.1
= control target key start
LH: loop header
LB: loop body
LE: loop exit
PB: predicated region body
PF: predicated region fallthrough
CT: control target
= control target key end

     0   :  { %18 = vsyncpa [#allocation3], 0  ;;  %s1251_s0 = inlined_call_operand.vmem [shape: f32[16,256], index: 0, kind: input, shape index: {}]   ;;  %s1252_s1 = inlined_call_operand.vmem [shape: f32[8,16], index: 1, kind: input, shape index: {}]   ;;  %s1253_s2 = inlined_call_operand.vmem [shape: f32[8,1], index: 2, kind: input, shape index: {}]   ;;  %s1254_s3 = inlined_call_operand.vmem [shape: f32[8,1], index: 3, kind: input, shape index: {}]   ;;  %s1255_s4 = inlined_call_operand.vmem [shape: f32[8,8], index: 4, kind: input, shape index: {}]   ;;  %s1256_s5 = inlined_call_operand.vmem [shape: f32[8,1], index: 5, kind: input, shape index: {}]   ;;  %s1257_s6 = inlined_call_operand.vmem [shape: f32[8,1], index: 6, kind: input, shape index: {}]   ;;  %s1258_s7 = inlined_call_operand.vmem [shape: f32[16,8], index: 7, kind: input, shape index: {}]   ;;  %s1259_s8 = inlined_call_operand.vmem [shape: f32[16,1], index: 8, kind: input, shape index: {}]   ;;  %s1260_s9 = inlined_call_operand.hbm [shape: f32[256,144], index: 9, kind: input, shape index: {}]   ;;  %s1261_s10 = inlined_call_operand.hbm [shape: f32[256,144], index: 10, kind: input, shape index: {}]   ;;  %s1262_s11 = inlined_call_operand.hbm [shape: f32[144,256], index: 11, kind: input, shape index: {}]   ;;  %s1263_s12 = inlined_call_operand.vmem [shape: f32[144,256], index: 12, kind: input, shape index: {}]   ;;  %s1264_s13 = inlined_call_operand.vmem [shape: f32[16,256], index: 13, kind: output, shape index: {}]  }
   0x1   :  { %19 = vsyncpa [#allocation5], 0  ;;  %s55_s27 = sshll.u32 %s1261_s10, 4  ;;  %s976_s28 = smov [#allocation4]   ;;  %s56_s27 = int_to_ptr.hbm [resolvable:$true] %s55_s27 }
   0x2   :  { %s57_s29 = sshll.u32 %s976_s28, 4  ;;  %s42_s15 = sshll.u32 %s1260_s9, 4  ;;  %s58_s29 = int_to_ptr.vmem [resolvable:$true] %s57_s29  ;;  %s43_s15 = int_to_ptr.hbm [resolvable:$true] %s42_s15 }
   0x3   :  { %s977_s16 = smov 256   ;;  %s978_s17 = smov 16  }
   0x4   :  { %63 = dma.hbm_to_vmem [thread:$0]  %s56_s27, 8192, %s58_s29, [#allocation5], %s977_s16, %s977_s16, %s978_s17  }
   0x5   :  { %s979_s18 = smov [#allocation2]   ;;  %s68_s22 = sshll.u32 %s1262_s11, 4  ;;  %s69_s22 = int_to_ptr.hbm [resolvable:$true] %s68_s22 }
   0x6   :  { %s44_s19 = sshll.u32 %s979_s18, 4  ;;  %s980_s10 = smov [#allocation6]   ;;  %s45_s19 = int_to_ptr.vmem [resolvable:$true] %s44_s19 }
   0x7   :  { %50 = dma.hbm_to_vmem [thread:$0]  %s43_s15, 8192, %s45_s19, [#allocation3], %s977_s16, %s977_s16, %s978_s17  }
   0x8   :  { %s70_s23 = sshll.u32 %s980_s10, 4  ;;  %s71_s23 = int_to_ptr.vmem [resolvable:$true] %s70_s23 }
   0x9   :  { %76 = dma.hbm_to_vmem [thread:$0]  %s69_s22, 4608, %s71_s23, [#allocation5], %s977_s16, %s977_s16, %s978_s17  }
   0xa   :  { %972 = dma.done.wait [#allocation3], 8192  }
   0xb   :  { %973 = vsyncadd [#allocation3], 4294959104 }
   0xc   :  { %974 = dma.done.wait [#allocation5], 12800  }
   0xd   :  { %975 = vsyncadd [#allocation5], 4294954496  ;;  %v981_v0 = vmov 0   ;;  %v94_v1 = vld [vmem:[%s1251_s0 + $0x10] sm:$0xff]  ;;  %v95_v2 = vld [vmem:[%s1251_s0 + $0x18] sm:$0xff]  ;;  %vm102_vm0 = vcmask 130048  }
   0xe   :  { %897 = vset.pattern.permute.xlu0 %v981_v0  ;;  %898 = vset.pattern.permute.xlu1 %v981_v0  ;;  %v96_v3 = vld [vmem:[%s1253_s2] sm:$0xff]  ;;  %v93_v5 = vld [vmem:[%s1251_s0 + $0x8] sm:$0xff]  ;;  %v190_v7 = vld [vmem:[#allocation2 + $0xf0] sm:$0xff]  ;;  %vm456_vm1 = vcmask 64512  }
   0xf   :  { %899 = vset.pattern.permute.xlu2 %v981_v0  ;;  %120 = vmatpush.msra.mxu0 %v94_v1  ;;  %v92_v4 = vld [vmem:[%s1251_s0] sm:$0xff]  ;;  %v222_v8 = vld [vmem:[#allocation2 + $0x1f0] sm:$0xff]  ;;  %v191_v9 = vld [vmem:[#allocation2 + $0xf8] sm:$0xff] }
  0x10   :  { %140 = vmatpush.msra.mxu1 %v95_v2  ;;  %v91_v6 = vld [vmem:[%s1252_s1] sm:$0xff]  ;;  %99 = vperm.xlu0 %897, %v96_v3   ;;  %v223_v10 = vld [vmem:[#allocation2 + $0x1f8] sm:$0xff]  ;;  %v189_v13 = vld [vmem:[#allocation2 + $0xe8] sm:$0xff] }
  0x11   :  { %121 = vmatpush.msra.mxu0 %v92_v4  ;;  %v188_v11 = vld [vmem:[#allocation2 + $0xe0] sm:$0xff]  ;;  %224 = vmatpush.msra.mxu2 %v190_v7  ;;  %v221_v14 = vld [vmem:[#allocation2 + $0x1e8] sm:$0xff]  ;;  %v186_v15 = vld [vmem:[#allocation2 + $0xd0] sm:$0xff] }
  0x12   :  { %141 = vmatpush.msra.mxu1 %v93_v5  ;;  %877 = vmatmul.msk.f32.vlgmr.msra.gmra.mxu0 %vm102_vm0, %v91_v6  ;;  %v220_v12 = vld [vmem:[#allocation2 + $0x1e0] sm:$0xff]  ;;  %v218_v16 = vld [vmem:[#allocation2 + $0x1d0] sm:$0xff]  ;;  %v187_v18 = vld [vmem:[#allocation2 + $0xd8] sm:$0xff] }
  0x13   :  { %878 = vmatmul.msk.f32.vlgmr.msra.gmra.mxu1 %vm102_vm0, %v91_v6  ;;  %244 = vmatpush.msra.mxu3 %v222_v8  ;;  %v146_v17 = vld [vmem:[%s1254_s3] sm:$0xff]  ;;  %v219_v19 = vld [vmem:[#allocation2 + $0x1d8] sm:$0xff]  ;;  %v185_v22 = vld [vmem:[#allocation2 + $0xc8] sm:$0xff] }
  0x14   :  { %264 = vmatpush.msrb.mxu0 %v191_v9  ;;  %284 = vmatpush.msrb.mxu1 %v223_v10  ;;  %v184_v20 = vld [vmem:[#allocation2 + $0xc0] sm:$0xff]  ;;  %v217_v23 = vld [vmem:[#allocation2 + $0x1c8] sm:$0xff]  ;;  %v182_v24 = vld [vmem:[#allocation2 + $0xb0] sm:$0xff] }
  0x15   :  { %225 = vmatpush.msra.mxu2 %v188_v11  ;;  %245 = vmatpush.msra.mxu3 %v220_v12  ;;  %v216_v21 = vld [vmem:[#allocation2 + $0x1c0] sm:$0xff]  ;;  %v214_v25 = vld [vmem:[#allocation2 + $0x1b0] sm:$0xff]  ;;  %v183_v26 = vld [vmem:[#allocation2 + $0xb8] sm:$0xff] }
  0x16   :  { %265 = vmatpush.msrb.mxu0 %v189_v13  ;;  %285 = vmatpush.msrb.mxu1 %v221_v14  ;;  %v215_v27 = vld [vmem:[#allocation2 + $0x1b8] sm:$0xff]  ;;  %v180_v28 = vld [vmem:[#allocation2 + $0xa0] sm:$0xff]  ;;  %v181_v30 = vld [vmem:[#allocation2 + $0xa8] sm:$0xff] }
  0x17   :  { %226 = vmatpush.msra.mxu2 %v186_v15  ;;  %246 = vmatpush.msra.mxu3 %v218_v16  ;;  %v212_v29 = vld [vmem:[#allocation2 + $0x1a0] sm:$0xff]  ;;  %v213_v31 = vld [vmem:[#allocation2 + $0x1a8] sm:$0xff]  ;;  %v178_v32 = vld [vmem:[#allocation2 + $0x90] sm:$0xff] }
  0x18   :  { %153 = vperm.xlu0 %897, %v146_v17   ;;  %266 = vmatpush.msrb.mxu0 %v187_v18  ;;  %v210_v33 = vld [vmem:[#allocation2 + $0x190] sm:$0xff]  ;;  %v179_v34 = vld [vmem:[#allocation2 + $0x98] sm:$0xff]  ;;  %v176_v36 = vld [vmem:[#allocation2 + $0x80] sm:$0xff] }
  0x19   :  { %286 = vmatpush.msrb.mxu1 %v219_v19  ;;  %227 = vmatpush.msra.mxu2 %v184_v20  ;;  %v211_v35 = vld [vmem:[#allocation2 + $0x198] sm:$0xff]  ;;  %v208_v37 = vld [vmem:[#allocation2 + $0x180] sm:$0xff]  ;;  %v177_v38 = vld [vmem:[#allocation2 + $0x88] sm:$0xff] }
  0x1a   :  { %247 = vmatpush.msra.mxu3 %v216_v21  ;;  %267 = vmatpush.msrb.mxu0 %v185_v22  ;;  %v209_v39 = vld [vmem:[#allocation2 + $0x188] sm:$0xff]  ;;  %v174_v40 = vld [vmem:[#allocation2 + $0x70] sm:$0xff]  ;;  %v175_v42 = vld [vmem:[#allocation2 + $0x78] sm:$0xff] }
  0x1b   :  { %287 = vmatpush.msrb.mxu1 %v217_v23  ;;  %228 = vmatpush.msra.mxu2 %v182_v24  ;;  %v206_v41 = vld [vmem:[#allocation2 + $0x170] sm:$0xff]  ;;  %v207_v43 = vld [vmem:[#allocation2 + $0x178] sm:$0xff]  ;;  %v172_v44 = vld [vmem:[#allocation2 + $0x60] sm:$0xff] }
  0x1c   :  { %248 = vmatpush.msra.mxu3 %v214_v25  ;;  %268 = vmatpush.msrb.mxu0 %v183_v26  ;;  %v204_v45 = vld [vmem:[#allocation2 + $0x160] sm:$0xff]  ;;  %v173_v46 = vld [vmem:[#allocation2 + $0x68] sm:$0xff]  ;;  %v170_v48 = vld [vmem:[#allocation2 + $0x50] sm:$0xff] }
  0x1d   :  { %288 = vmatpush.msrb.mxu1 %v215_v27  ;;  %229 = vmatpush.msra.mxu2 %v180_v28  ;;  %v205_v47 = vld [vmem:[#allocation2 + $0x168] sm:$0xff]  ;;  %v202_v49 = vld [vmem:[#allocation2 + $0x150] sm:$0xff]  ;;  %v171_v50 = vld [vmem:[#allocation2 + $0x58] sm:$0xff] }
  0x1e   :  { %249 = vmatpush.msra.mxu3 %v212_v29  ;;  %269 = vmatpush.msrb.mxu0 %v181_v30  ;;  %v203_v51 = vld [vmem:[#allocation2 + $0x158] sm:$0xff]  ;;  %v168_v52 = vld [vmem:[#allocation2 + $0x40] sm:$0xff]  ;;  %v169_v54 = vld [vmem:[#allocation2 + $0x48] sm:$0xff] }
  0x1f   :  { %289 = vmatpush.msrb.mxu1 %v213_v31  ;;  %230 = vmatpush.msra.mxu2 %v178_v32  ;;  %v200_v53 = vld [vmem:[#allocation2 + $0x140] sm:$0xff]  ;;  %v201_v55 = vld [vmem:[#allocation2 + $0x148] sm:$0xff]  ;;  %v166_v56 = vld [vmem:[#allocation2 + $0x30] sm:$0xff] }
  0x20   :  { %250 = vmatpush.msra.mxu3 %v210_v33  ;;  %270 = vmatpush.msrb.mxu0 %v179_v34  ;;  %v198_v57 = vld [vmem:[#allocation2 + $0x130] sm:$0xff]  ;;  %v167_v58 = vld [vmem:[#allocation2 + $0x38] sm:$0xff]  ;;  %v164_v60 = vld [vmem:[#allocation2 + $0x20] sm:$0xff] }
  0x21   :  { %290 = vmatpush.msrb.mxu1 %v211_v35  ;;  %231 = vmatpush.msra.mxu2 %v176_v36  ;;  %v199_v59 = vld [vmem:[#allocation2 + $0x138] sm:$0xff]  ;;  %v196_v61 = vld [vmem:[#allocation2 + $0x120] sm:$0xff]  ;;  %v165_v62 = vld [vmem:[#allocation2 + $0x28] sm:$0xff] }
  0x22   :  { %251 = vmatpush.msra.mxu3 %v208_v37  ;;  %271 = vmatpush.msrb.mxu0 %v177_v38  ;;  %v197_v63 = vld [vmem:[#allocation2 + $0x128] sm:$0xff]  ;;  %v162_v0 = vld [vmem:[#allocation2 + $0x10] sm:$0xff]  ;;  %v163_v2 = vld [vmem:[#allocation2 + $0x18] sm:$0xff] }
  0x23   :  { %291 = vmatpush.msrb.mxu1 %v209_v39  ;;  %232 = vmatpush.msra.mxu2 %v174_v40  ;;  %v194_v1 = vld [vmem:[#allocation2 + $0x110] sm:$0xff]  ;;  %v195_v3 = vld [vmem:[#allocation2 + $0x118] sm:$0xff]  ;;  %v160_v4 = vld [vmem:[#allocation2] sm:$0xff] }
  0x24   :  { %252 = vmatpush.msra.mxu3 %v206_v41  ;;  %272 = vmatpush.msrb.mxu0 %v175_v42  ;;  %v192_v5 = vld [vmem:[#allocation2 + $0x100] sm:$0xff]  ;;  %v161_v6 = vld [vmem:[#allocation2 + $0x8] sm:$0xff]  ;;  %v334_v8 = vld [vmem:[#allocation4 + $0xf0] sm:$0xff] }
  0x25   :  { %292 = vmatpush.msrb.mxu1 %v207_v43  ;;  %233 = vmatpush.msra.mxu2 %v172_v44  ;;  %v193_v7 = vld [vmem:[#allocation2 + $0x108] sm:$0xff]  ;;  %v366_v9 = vld [vmem:[#allocation4 + $0x1f0] sm:$0xff]  ;;  %v335_v10 = vld [vmem:[#allocation4 + $0xf8] sm:$0xff] }
  0x26   :  { %253 = vmatpush.msra.mxu3 %v204_v45  ;;  %273 = vmatpush.msrb.mxu0 %v173_v46  ;;  %v367_v11 = vld [vmem:[#allocation4 + $0x1f8] sm:$0xff]  ;;  %v332_v12 = vld [vmem:[#allocation4 + $0xe0] sm:$0xff]  ;;  %v333_v14 = vld [vmem:[#allocation4 + $0xe8] sm:$0xff] }
  0x27   :  { %293 = vmatpush.msrb.mxu1 %v205_v47  ;;  %234 = vmatpush.msra.mxu2 %v170_v48  ;;  %v364_v13 = vld [vmem:[#allocation4 + $0x1e0] sm:$0xff]  ;;  %v365_v15 = vld [vmem:[#allocation4 + $0x1e8] sm:$0xff]  ;;  %v330_v16 = vld [vmem:[#allocation4 + $0xd0] sm:$0xff] }
  0x28   :  { %254 = vmatpush.msra.mxu3 %v202_v49  ;;  %274 = vmatpush.msrb.mxu0 %v171_v50  ;;  %v362_v17 = vld [vmem:[#allocation4 + $0x1d0] sm:$0xff]  ;;  %v331_v18 = vld [vmem:[#allocation4 + $0xd8] sm:$0xff]  ;;  %v328_v20 = vld [vmem:[#allocation4 + $0xc0] sm:$0xff] }
  0x29   :  { %294 = vmatpush.msrb.mxu1 %v203_v51  ;;  %235 = vmatpush.msra.mxu2 %v168_v52  ;;  %v363_v19 = vld [vmem:[#allocation4 + $0x1d8] sm:$0xff]  ;;  %v360_v21 = vld [vmem:[#allocation4 + $0x1c0] sm:$0xff]  ;;  %v329_v22 = vld [vmem:[#allocation4 + $0xc8] sm:$0xff] }
  0x2a   :  { %255 = vmatpush.msra.mxu3 %v200_v53  ;;  %275 = vmatpush.msrb.mxu0 %v169_v54  ;;  %v361_v23 = vld [vmem:[#allocation4 + $0x1c8] sm:$0xff]  ;;  %v326_v24 = vld [vmem:[#allocation4 + $0xb0] sm:$0xff]  ;;  %v327_v26 = vld [vmem:[#allocation4 + $0xb8] sm:$0xff] }
  0x2b   :  { %295 = vmatpush.msrb.mxu1 %v201_v55  ;;  %236 = vmatpush.msra.mxu2 %v166_v56  ;;  %v358_v25 = vld [vmem:[#allocation4 + $0x1b0] sm:$0xff]  ;;  %v359_v27 = vld [vmem:[#allocation4 + $0x1b8] sm:$0xff]  ;;  %v324_v28 = vld [vmem:[#allocation4 + $0xa0] sm:$0xff] }
  0x2c   :  { %256 = vmatpush.msra.mxu3 %v198_v57  ;;  %276 = vmatpush.msrb.mxu0 %v167_v58  ;;  %v356_v29 = vld [vmem:[#allocation4 + $0x1a0] sm:$0xff]  ;;  %v325_v30 = vld [vmem:[#allocation4 + $0xa8] sm:$0xff]  ;;  %v322_v32 = vld [vmem:[#allocation4 + $0x90] sm:$0xff] }
  0x2d   :  { %296 = vmatpush.msrb.mxu1 %v199_v59  ;;  %237 = vmatpush.msra.mxu2 %v164_v60  ;;  %v357_v31 = vld [vmem:[#allocation4 + $0x1a8] sm:$0xff]  ;;  %v354_v33 = vld [vmem:[#allocation4 + $0x190] sm:$0xff]  ;;  %v323_v34 = vld [vmem:[#allocation4 + $0x98] sm:$0xff] }
  0x2e   :  { %257 = vmatpush.msra.mxu3 %v196_v61  ;;  %277 = vmatpush.msrb.mxu0 %v165_v62  ;;  %v355_v35 = vld [vmem:[#allocation4 + $0x198] sm:$0xff]  ;;  %v320_v36 = vld [vmem:[#allocation4 + $0x80] sm:$0xff]  ;;  %v321_v38 = vld [vmem:[#allocation4 + $0x88] sm:$0xff] }
  0x2f   :  { %297 = vmatpush.msrb.mxu1 %v197_v63  ;;  %238 = vmatpush.msra.mxu2 %v162_v0  ;;  %v352_v37 = vld [vmem:[#allocation4 + $0x180] sm:$0xff]  ;;  %v353_v39 = vld [vmem:[#allocation4 + $0x188] sm:$0xff]  ;;  %v318_v40 = vld [vmem:[#allocation4 + $0x70] sm:$0xff] }
  0x30   :  { %258 = vmatpush.msra.mxu3 %v194_v1  ;;  %278 = vmatpush.msrb.mxu0 %v163_v2  ;;  %v350_v41 = vld [vmem:[#allocation4 + $0x170] sm:$0xff]  ;;  %v319_v42 = vld [vmem:[#allocation4 + $0x78] sm:$0xff]  ;;  %v316_v44 = vld [vmem:[#allocation4 + $0x60] sm:$0xff] }
  0x31   :  { %298 = vmatpush.msrb.mxu1 %v195_v3  ;;  %239 = vmatpush.msra.mxu2 %v160_v4  ;;  %v351_v43 = vld [vmem:[#allocation4 + $0x178] sm:$0xff]  ;;  %v348_v45 = vld [vmem:[#allocation4 + $0x160] sm:$0xff]  ;;  %v317_v46 = vld [vmem:[#allocation4 + $0x68] sm:$0xff] }
  0x32   :  { %259 = vmatpush.msra.mxu3 %v192_v5  ;;  %279 = vmatpush.msrb.mxu0 %v161_v6  ;;  %v349_v47 = vld [vmem:[#allocation4 + $0x168] sm:$0xff]  ;;  %v314_v48 = vld [vmem:[#allocation4 + $0x50] sm:$0xff]  ;;  %v315_v50 = vld [vmem:[#allocation4 + $0x58] sm:$0xff] }
  0x33   :  { %299 = vmatpush.msrb.mxu1 %v193_v7  ;;  %368 = vmatpush.msrb.mxu2 %v334_v8  ;;  %v346_v49 = vld [vmem:[#allocation4 + $0x150] sm:$0xff]  ;;  %v347_v51 = vld [vmem:[#allocation4 + $0x158] sm:$0xff]  ;;  %v312_v52 = vld [vmem:[#allocation4 + $0x40] sm:$0xff] }
  0x34   :  { %388 = vmatpush.msrb.mxu3 %v366_v9  ;;  %408 = vmatpush.msra.mxu0 %v335_v10  ;;  %v344_v53 = vld [vmem:[#allocation4 + $0x140] sm:$0xff]  ;;  %v313_v54 = vld [vmem:[#allocation4 + $0x48] sm:$0xff]  ;;  %v310_v56 = vld [vmem:[#allocation4 + $0x30] sm:$0xff] }
  0x35   :  { %428 = vmatpush.msra.mxu1 %v367_v11  ;;  %369 = vmatpush.msrb.mxu2 %v332_v12  ;;  %v345_v55 = vld [vmem:[#allocation4 + $0x148] sm:$0xff]  ;;  %v342_v57 = vld [vmem:[#allocation4 + $0x130] sm:$0xff]  ;;  %v311_v58 = vld [vmem:[#allocation4 + $0x38] sm:$0xff] }
  0x36   :  { %389 = vmatpush.msrb.mxu3 %v364_v13  ;;  %409 = vmatpush.msra.mxu0 %v333_v14  ;;  %v343_v59 = vld [vmem:[#allocation4 + $0x138] sm:$0xff]  ;;  %v308_v60 = vld [vmem:[#allocation4 + $0x20] sm:$0xff]  ;;  %v309_v62 = vld [vmem:[#allocation4 + $0x28] sm:$0xff] }
  0x37   :  { %429 = vmatpush.msra.mxu1 %v365_v15  ;;  %370 = vmatpush.msrb.mxu2 %v330_v16  ;;  %v340_v61 = vld [vmem:[#allocation4 + $0x120] sm:$0xff]  ;;  %v341_v63 = vld [vmem:[#allocation4 + $0x128] sm:$0xff]  ;;  %v306_v0 = vld [vmem:[#allocation4 + $0x10] sm:$0xff] }
  0x38   :  { %390 = vmatpush.msrb.mxu3 %v362_v17  ;;  %410 = vmatpush.msra.mxu0 %v331_v18  ;;  %v338_v1 = vld [vmem:[#allocation4 + $0x110] sm:$0xff]  ;;  %v307_v2 = vld [vmem:[#allocation4 + $0x18] sm:$0xff]  ;;  %v304_v4 = vld [vmem:[#allocation4] sm:$0xff] }
  0x39   :  { %430 = vmatpush.msra.mxu1 %v363_v19  ;;  %371 = vmatpush.msrb.mxu2 %v328_v20  ;;  %v339_v3 = vld [vmem:[#allocation4 + $0x118] sm:$0xff]  ;;  %v336_v5 = vld [vmem:[#allocation4 + $0x100] sm:$0xff]  ;;  %v305_v6 = vld [vmem:[#allocation4 + $0x8] sm:$0xff] }
  0x3a   :  { %391 = vmatpush.msrb.mxu3 %v360_v21  ;;  %411 = vmatpush.msra.mxu0 %v329_v22  ;;  %v337_v7 = vld [vmem:[#allocation4 + $0x108] sm:$0xff]  ;;  %v449_v22 = vld [vmem:[%s1256_s5] sm:$0xff] }
  0x3b   :  { %431 = vmatpush.msra.mxu1 %v361_v23  ;;  %372 = vmatpush.msrb.mxu2 %v326_v24  ;;  %v450_v23 = vld [vmem:[%s1257_s6] sm:$0xff]  ;;  %v627_v24 = vld [vmem:[%s1263_s12 + $0xf0] sm:$0xff] }
  0x3c   :  { %392 = vmatpush.msrb.mxu3 %v358_v25  ;;  %412 = vmatpush.msra.mxu0 %v327_v26  ;;  %v625_v25 = vld [vmem:[%s1263_s12 + $0xe0] sm:$0xff] }
  0x3d   :  { %432 = vmatpush.msra.mxu1 %v359_v27  ;;  %373 = vmatpush.msrb.mxu2 %v324_v28 }
  0x3e   :  { %393 = vmatpush.msrb.mxu3 %v356_v29  ;;  %413 = vmatpush.msra.mxu0 %v325_v30 }
  0x3f   :  { %433 = vmatpush.msra.mxu1 %v357_v31  ;;  %374 = vmatpush.msrb.mxu2 %v322_v32  ;;  %v448_v31 = vld [vmem:[%s1255_s4] sm:$0xff] }
  0x40   :  { %394 = vmatpush.msrb.mxu3 %v354_v33  ;;  %414 = vmatpush.msra.mxu0 %v323_v34 }
  0x41   :  { %434 = vmatpush.msra.mxu1 %v355_v35  ;;  %375 = vmatpush.msrb.mxu2 %v320_v36  ;;  %v631_v35 = vld [vmem:[%s1263_s12 + $0x110] sm:$0xff] }
  0x42   :  { %395 = vmatpush.msrb.mxu3 %v352_v37  ;;  %415 = vmatpush.msra.mxu0 %v321_v38  ;;  %v629_v37 = vld [vmem:[%s1263_s12 + $0x100] sm:$0xff] }
  0x43   :  { %435 = vmatpush.msra.mxu1 %v353_v39  ;;  %376 = vmatpush.msrb.mxu2 %v318_v40 }
  0x44   :  { %396 = vmatpush.msrb.mxu3 %v350_v41  ;;  %416 = vmatpush.msra.mxu0 %v319_v42  ;;  %v628_v41 = vld [vmem:[%s1263_s12 + $0xf8] sm:$0xff]  ;;  %v591_v42 = vld [vmem:[#allocation6 + $0xf0] sm:$0xff] }
  0x45   :  { %436 = vmatpush.msra.mxu1 %v351_v43  ;;  %377 = vmatpush.msrb.mxu2 %v316_v44  ;;  %v626_v43 = vld [vmem:[%s1263_s12 + $0xe8] sm:$0xff]  ;;  %v623_v44 = vld [vmem:[%s1263_s12 + $0xd0] sm:$0xff] }
  0x46   :  { %397 = vmatpush.msrb.mxu3 %v348_v45  ;;  %417 = vmatpush.msra.mxu0 %v317_v46  ;;  %v624_v45 = vld [vmem:[%s1263_s12 + $0xd8] sm:$0xff]  ;;  %v589_v46 = vld [vmem:[#allocation6 + $0xe0] sm:$0xff] }
  0x47   :  { %437 = vmatpush.msra.mxu1 %v349_v47  ;;  %378 = vmatpush.msrb.mxu2 %v314_v48  ;;  %v621_v47 = vld [vmem:[%s1263_s12 + $0xc0] sm:$0xff]  ;;  %v622_v48 = vld [vmem:[%s1263_s12 + $0xc8] sm:$0xff] }
  0x48   :  { %398 = vmatpush.msrb.mxu3 %v346_v49  ;;  %418 = vmatpush.msra.mxu0 %v315_v50  ;;  %v587_v49 = vld [vmem:[#allocation6 + $0xd0] sm:$0xff] }
  0x49   :  { %438 = vmatpush.msra.mxu1 %v347_v51  ;;  %379 = vmatpush.msrb.mxu2 %v312_v52  ;;  %v619_v50 = vld [vmem:[%s1263_s12 + $0xb0] sm:$0xff]  ;;  %v620_v51 = vld [vmem:[%s1263_s12 + $0xb8] sm:$0xff]  ;;  %v585_v52 = vld [vmem:[#allocation6 + $0xc0] sm:$0xff] }
  0x4a   :  { %399 = vmatpush.msrb.mxu3 %v344_v53  ;;  %419 = vmatpush.msra.mxu0 %v313_v54  ;;  %v617_v53 = vld [vmem:[%s1263_s12 + $0xa0] sm:$0xff]  ;;  %v618_v54 = vld [vmem:[%s1263_s12 + $0xa8] sm:$0xff] }
  0x4b   :  { %439 = vmatpush.msra.mxu1 %v345_v55  ;;  %380 = vmatpush.msrb.mxu2 %v310_v56  ;;  %v583_v55 = vld [vmem:[#allocation6 + $0xb0] sm:$0xff] }
  0x4c   :  { %400 = vmatpush.msrb.mxu3 %v342_v57  ;;  %420 = vmatpush.msra.mxu0 %v311_v58  ;;  %v615_v56 = vld [vmem:[%s1263_s12 + $0x90] sm:$0xff]  ;;  %v616_v57 = vld [vmem:[%s1263_s12 + $0x98] sm:$0xff]  ;;  %v581_v58 = vld [vmem:[#allocation6 + $0xa0] sm:$0xff] }
  0x4d   :  { %440 = vmatpush.msra.mxu1 %v343_v59  ;;  %381 = vmatpush.msrb.mxu2 %v308_v60  ;;  %v613_v59 = vld [vmem:[%s1263_s12 + $0x80] sm:$0xff]  ;;  %v614_v60 = vld [vmem:[%s1263_s12 + $0x88] sm:$0xff] }
  0x4e   :  { %401 = vmatpush.msrb.mxu3 %v340_v61  ;;  %421 = vmatpush.msra.mxu0 %v309_v62  ;;  %v579_v61 = vld [vmem:[#allocation6 + $0x90] sm:$0xff] }
  0x4f   :  { %441 = vmatpush.msra.mxu1 %v341_v63  ;;  %382 = vmatpush.msrb.mxu2 %v306_v0  ;;  %v611_v62 = vld [vmem:[%s1263_s12 + $0x70] sm:$0xff]  ;;  %v612_v63 = vld [vmem:[%s1263_s12 + $0x78] sm:$0xff]  ;;  %v577_v0 = vld [vmem:[#allocation6 + $0x80] sm:$0xff] }
  0x50   :  { %402 = vmatpush.msrb.mxu3 %v338_v1  ;;  %422 = vmatpush.msra.mxu0 %v307_v2  ;;  %v609_v1 = vld [vmem:[%s1263_s12 + $0x60] sm:$0xff]  ;;  %v610_v2 = vld [vmem:[%s1263_s12 + $0x68] sm:$0xff] }
  0x51   :  { %442 = vmatpush.msra.mxu1 %v339_v3  ;;  %383 = vmatpush.msrb.mxu2 %v304_v4  ;;  %v575_v3 = vld [vmem:[#allocation6 + $0x70] sm:$0xff]  ;;  %v632_v4 = vld [vmem:[%s1263_s12 + $0x118] sm:$0xff] }
  0x52   :  { %403 = vmatpush.msrb.mxu3 %v336_v5  ;;  %423 = vmatpush.msra.mxu0 %v305_v6  ;;  %v607_v5 = vld [vmem:[%s1263_s12 + $0x50] sm:$0xff]  ;;  %v608_v6 = vld [vmem:[%s1263_s12 + $0x58] sm:$0xff] }
  0x53   :  { %443 = vmatpush.msra.mxu1 %v337_v7  ;;  %453 = vperm.xlu1 %898, %v449_v22   ;;  %v573_v7 = vld [vmem:[#allocation6 + $0x60] sm:$0xff]  ;;  %v599_v22 = vld [vmem:[%s1263_s12 + $0x10] sm:$0xff] }
  0x5b   :  { %506 = vperm.xlu1 %898, %v450_v23   ;;  %v600_v23 = vld [vmem:[%s1263_s12 + $0x18] sm:$0xff] }
  0x82   :  { %v100_v8 = vpop.permute.xlu0 %99 }
  0x8a   :  { %v154_v15 = vpop.permute.xlu0 %153 }
  0x8f   :  { %v123_v9 = vpop.f32.mrf.mxu0 }
  0x90   :  { %v143_v10 = vpop.f32.mrf.mxu1  ;;  %v124_v11 = vadd.f32 %v123_v9, %v100_v8  ;;  %v605_v9 = vld [vmem:[%s1263_s12 + $0x40] sm:$0xff] }
  0x91   :  { %v144_v12 = vadd.f32 %v143_v10, %v100_v8  ;;  %v630_v8 = vld [vmem:[%s1263_s12 + $0x108] sm:$0xff] }
  0x92   :  { %v149_v13 = vmin.f32 %v124_v11, 0.0  ;;  %v147_v16 = vmax.f32 %v124_v11, 0.0  ;;  %v606_v10 = vld [vmem:[%s1263_s12 + $0x48] sm:$0xff]  ;;  %v571_v11 = vld [vmem:[#allocation6 + $0x50] sm:$0xff] }
  0x93   :  { %v150_v14 = vmin.f32 %v144_v12, 0.0  ;;  %v148_v18 = vmax.f32 %v144_v12, 0.0  ;;  %v595_v12 = vld [vmem:[#allocation6 + $0x110] sm:$0xff] }
  0x94   :  { %v156_v17 = vmul.f32 %v154_v15, %v149_v13  ;;  %v603_v13 = vld [vmem:[%s1263_s12 + $0x30] sm:$0xff] }
  0x95   :  { %v157_v19 = vmul.f32 %v154_v15, %v150_v14  ;;  %v604_v14 = vld [vmem:[%s1263_s12 + $0x38] sm:$0xff]  ;;  %v569_v15 = vld [vmem:[#allocation6 + $0x40] sm:$0xff] }
  0x96   :  { %v1084_v20 = vadd.f32 %v156_v17, %v147_v16  ;;  %v593_v16 = vld [vmem:[#allocation6 + $0x100] sm:$0xff] }
  0x97   :  { %v1086_v21 = vadd.f32 %v157_v19, %v148_v18  ;;  %v601_v17 = vld [vmem:[%s1263_s12 + $0x20] sm:$0xff]  ;;  %v602_v18 = vld [vmem:[%s1263_s12 + $0x28] sm:$0xff]  ;;  %v567_v19 = vld [vmem:[#allocation6 + $0x30] sm:$0xff] }
  0x98   :  { %240 = vmatmul.f32.vlgmr.msra.gmra.mxu2 %v1084_v20  ;;  %280 = vmatmul.f32.vlgmr.msrb.gmra.mxu0 %v1084_v20 }
  0x99   :  { %260 = vmatmul.f32.vlgmr.msra.gmra.mxu3 %v1086_v21  ;;  %300 = vmatmul.f32.vlgmr.msrb.gmra.mxu1 %v1086_v21 }
  0x9a   :  { %636 = vmatpush.msra.mxu2 %v627_v24  ;;  %v565_v24 = vld [vmem:[#allocation6 + $0x20] sm:$0xff] }
  0x9c   :  { %637 = vmatpush.msra.mxu2 %v625_v25  ;;  %v597_v25 = vld [vmem:[%s1263_s12] sm:$0xff] }
  0x9e   :  { %638 = vmatpush.msra.mxu2 %v623_v44  ;;  %v592_v44 = vld [vmem:[#allocation6 + $0xf8] sm:$0xff] }
  0xa0   :  { %384 = vmatmul.f32.vlgmr.msrb.gmra.mxu2 %v1084_v20  ;;  %424 = vmatmul.f32.vlgmr.msra.gmra.mxu0 %v1084_v20 }
  0xa1   :  { %404 = vmatmul.f32.vlgmr.msrb.gmra.mxu3 %v1086_v21  ;;  %444 = vmatmul.f32.vlgmr.msra.gmra.mxu1 %v1086_v21 }
  0xa2   :  { %639 = vmatpush.msra.mxu2 %v621_v47 }
  0xa4   :  { %640 = vmatpush.msra.mxu2 %v619_v50 }
  0xa6   :  { %641 = vmatpush.msra.mxu2 %v617_v53 }
  0xa8   :  { %642 = vmatpush.msra.mxu2 %v615_v56 }
  0xaa   :  { %643 = vmatpush.msra.mxu2 %v613_v59 }
  0xac   :  { %644 = vmatpush.msra.mxu2 %v611_v62 }
  0xae   :  { %645 = vmatpush.msra.mxu2 %v609_v1  ;;  %v576_v1 = vld [vmem:[#allocation6 + $0x78] sm:$0xff] }
  0xb0   :  { %646 = vmatpush.msra.mxu2 %v607_v5  ;;  %v568_v5 = vld [vmem:[#allocation6 + $0x38] sm:$0xff] }
  0xb2   :  { %647 = vmatpush.msra.mxu2 %v605_v9 }
  0xb4   :  { %648 = vmatpush.msra.mxu2 %v603_v13 }
  0xb6   :  { %649 = vmatpush.msra.mxu2 %v601_v17 }
  0xb8   :  { %650 = vmatpush.msra.mxu2 %v599_v22  ;;  %v804_v22 = vld [vmem:[%s1259_s8 + $0x8] sm:$0xff] }
  0xba   :  { %651 = vmatpush.msra.mxu2 %v597_v25 }
 0x115   :  { %v281_v26 = vpop.f32.mrf.mxu0 }
 0x116   :  { %v301_v27 = vpop.f32.mrf.mxu1 }
 0x117   :  { %v302_v32 = vadd.f32 %v301_v27, %v281_v26  ;;  %v598_v26 = vld [vmem:[%s1263_s12 + $0x8] sm:$0xff]  ;;  %v563_v27 = vld [vmem:[#allocation6 + $0x10] sm:$0xff] }
 0x11b   :  { %v241_v28 = vpop.f32.mrf.mxu2 }
 0x11c   :  { %v261_v29 = vpop.f32.mrf.mxu3 }
 0x11d   :  { %v262_v30 = vadd.f32 %v261_v29, %v241_v28  ;;  %v425_v33 = vpop.f32.mrf.mxu0  ;;  %v561_v28 = vld [vmem:[#allocation6] sm:$0xff]  ;;  %v596_v29 = vld [vmem:[#allocation6 + $0x118] sm:$0xff] }
 0x11e   :  { %v445_v34 = vpop.f32.mrf.mxu1  ;;  %793 = vmatpush.msrb.mxu2 %v596_v29 }
 0x11f   :  { %475 = vmatpush.msra.mxu3 %v262_v30  ;;  %v446_v36 = vadd.f32 %v445_v34, %v425_v33  ;;  %v594_v30 = vld [vmem:[#allocation6 + $0x108] sm:$0xff] }
 0x120   :  { %879 = vmatmul.msk.f32.vlgmr.msra.gmra.mxu3 %vm456_vm1, %v448_v31  ;;  %794 = vmatpush.msrb.mxu2 %v594_v30 }
 0x121   :  { %495 = vmatpush.msrb.mxu3 %v302_v32  ;;  %548 = vmatpush.msrb.mxu1 %v446_v36 }
 0x122   :  { %882 = vmatmul.msk.f32.vlgmr.msrb.gmra.mxu1 %vm456_vm1, %v448_v31 }
 0x123   :  { %670 = vmatpush.msra.mxu3 %v631_v35  ;;  %v385_v38 = vpop.f32.mrf.mxu2  ;;  %710 = vmatpush.msra.mxu1 %v632_v4  ;;  %v570_v4 = vld [vmem:[#allocation6 + $0x48] sm:$0xff] }
 0x124   :  { %v405_v39 = vpop.f32.mrf.mxu3 }
 0x125   :  { %671 = vmatpush.msra.mxu3 %v629_v37  ;;  %v406_v40 = vadd.f32 %v405_v39, %v385_v38  ;;  %711 = vmatpush.msra.mxu1 %v630_v8  ;;  %v562_v8 = vld [vmem:[#allocation6 + $0x8] sm:$0xff] }
 0x127   :  { %528 = vmatpush.msrb.mxu0 %v406_v40  ;;  %753 = vmatpush.msrb.mxu1 %v595_v12 }
 0x128   :  { %880 = vmatmul.msk.f32.vlgmr.msrb.gmra.mxu3 %vm456_vm1, %v448_v31  ;;  %881 = vmatmul.msk.f32.vlgmr.msrb.gmra.mxu0 %vm456_vm1, %v448_v31  ;;  %v454_v31 = vpop.permute.xlu1 %453 }
 0x129   :  { %676 = vmatpush.msra.mxu0 %v628_v41  ;;  %719 = vmatpush.msrb.mxu3 %v591_v42 }
 0x12a   :  { %754 = vmatpush.msrb.mxu1 %v593_v16  ;;  %v803_v16 = vld [vmem:[%s1259_s8] sm:$0xff] }
 0x12b   :  { %677 = vmatpush.msra.mxu0 %v626_v43  ;;  %720 = vmatpush.msrb.mxu3 %v589_v46  ;;  %v590_v46 = vld [vmem:[#allocation6 + $0xe8] sm:$0xff] }
 0x12c   :  { %807 = vperm.xlu2 %899, %v803_v16  }
 0x12d   :  { %678 = vmatpush.msra.mxu0 %v624_v45  ;;  %721 = vmatpush.msrb.mxu3 %v587_v49 }
 0x12f   :  { %679 = vmatpush.msra.mxu0 %v622_v48  ;;  %722 = vmatpush.msrb.mxu3 %v585_v52 }
 0x130   :  { %v507_v36 = vpop.permute.xlu1 %506 }
 0x131   :  { %680 = vmatpush.msra.mxu0 %v620_v51  ;;  %723 = vmatpush.msrb.mxu3 %v583_v55  ;;  %v588_v51 = vld [vmem:[#allocation6 + $0xd8] sm:$0xff]  ;;  %v586_v55 = vld [vmem:[#allocation6 + $0xc8] sm:$0xff] }
 0x133   :  { %681 = vmatpush.msra.mxu0 %v618_v54  ;;  %724 = vmatpush.msrb.mxu3 %v581_v58  ;;  %v584_v58 = vld [vmem:[#allocation6 + $0xb8] sm:$0xff] }
 0x134   :  { %812 = vperm.xlu2 %899, %v804_v22  }
 0x135   :  { %682 = vmatpush.msra.mxu0 %v616_v57  ;;  %725 = vmatpush.msrb.mxu3 %v579_v61  ;;  %v582_v61 = vld [vmem:[#allocation6 + $0xa8] sm:$0xff] }
 0x137   :  { %683 = vmatpush.msra.mxu0 %v614_v60  ;;  %726 = vmatpush.msrb.mxu3 %v577_v0  ;;  %v578_v0 = vld [vmem:[#allocation6 + $0x88] sm:$0xff] }
 0x139   :  { %684 = vmatpush.msra.mxu0 %v612_v63  ;;  %727 = vmatpush.msrb.mxu3 %v575_v3  ;;  %v580_v63 = vld [vmem:[#allocation6 + $0x98] sm:$0xff] }
 0x13a   :  { %v572_v3 = vld [vmem:[#allocation6 + $0x58] sm:$0xff] }
 0x13b   :  { %685 = vmatpush.msra.mxu0 %v610_v2  ;;  %728 = vmatpush.msrb.mxu3 %v573_v7  ;;  %v574_v2 = vld [vmem:[#allocation6 + $0x68] sm:$0xff]  ;;  %v564_v7 = vld [vmem:[#allocation6 + $0x18] sm:$0xff] }
 0x13d   :  { %686 = vmatpush.msra.mxu0 %v608_v6  ;;  %729 = vmatpush.msrb.mxu3 %v571_v11  ;;  %v566_v6 = vld [vmem:[#allocation6 + $0x28] sm:$0xff] }
 0x13f   :  { %687 = vmatpush.msra.mxu0 %v606_v10  ;;  %730 = vmatpush.msrb.mxu3 %v569_v15 }
 0x141   :  { %688 = vmatpush.msra.mxu0 %v604_v14  ;;  %731 = vmatpush.msrb.mxu3 %v567_v19  ;;  %v801_v19 = vld [vmem:[%s1258_s7] sm:$0xff] }
 0x143   :  { %689 = vmatpush.msra.mxu0 %v602_v18  ;;  %732 = vmatpush.msrb.mxu3 %v565_v24 }
 0x145   :  { %690 = vmatpush.msra.mxu0 %v600_v23  ;;  %733 = vmatpush.msrb.mxu3 %v563_v27  ;;  %v802_v23 = vld [vmem:[%s1258_s7 + $0x8] sm:$0xff] }
 0x147   :  { %691 = vmatpush.msra.mxu0 %v598_v26  ;;  %734 = vmatpush.msrb.mxu3 %v561_v28 }
 0x186   :  { %v808_v30 = vpop.permute.xlu2 %807 }
 0x19f   :  { %v550_v32 = vpop.f32.mrf.mxu1 }
 0x1a0   :  { %v551_v33 = vadd.f32 %v550_v32, %v454_v31 }
 0x1a2   :  { %v556_v34 = vmin.f32 %v551_v33, 0.0  ;;  %v554_v38 = vmax.f32 %v551_v33, 0.0  ;;  %v813_v33 = vpop.permute.xlu2 %812 }
 0x1a3   :  { %v477_v35 = vpop.f32.mrf.mxu3 }
 0x1a4   :  { %v478_v37 = vadd.f32 %v477_v35, %v454_v31  ;;  %v558_v39 = vmul.f32 %v556_v34, %v507_v36 }
 0x1a5   :  { %v530_v40 = vpop.f32.mrf.mxu0 }
 0x1a6   :  { %v531_v41 = vadd.f32 %v530_v40, %v454_v31  ;;  %v560_v42 = vadd.f32 %v558_v39, %v554_v38  ;;  %v502_v43 = vmin.f32 %v478_v37, 0.0  ;;  %v500_v54 = vmax.f32 %v478_v37, 0.0 }
 0x1a8   :  { %v555_v45 = vmin.f32 %v531_v41, 0.0  ;;  %883 = vmatmul.msk.f32.vlgmr.msra.gmra.mxu3 %vm102_vm0, %v560_v42  ;;  %884 = vmatmul.msk.f32.vlgmr.msra.gmra.mxu1 %vm102_vm0, %v560_v42  ;;  %v553_v47 = vmax.f32 %v531_v41, 0.0  ;;  %v509_v49 = vmul.f32 %v507_v36, %v502_v43 }
 0x1a9   :  { %759 = vmatpush.msra.mxu1 %v592_v44 }
 0x1aa   :  { %v557_v48 = vmul.f32 %v555_v45, %v507_v36  ;;  %v511_v57 = vadd.f32 %v509_v49, %v500_v54 }
 0x1ab   :  { %v497_v50 = vpop.f32.mrf.mxu3  ;;  %760 = vmatpush.msra.mxu1 %v590_v46 }
 0x1ac   :  { %v559_v52 = vadd.f32 %v557_v48, %v553_v47  ;;  %v498_v53 = vadd.f32 %v497_v50, %v454_v31 }
 0x1ad   :  { %761 = vmatpush.msra.mxu1 %v588_v51 }
 0x1ae   :  { %v503_v56 = vmin.f32 %v498_v53, 0.0  ;;  %652 = vmatmul.f32.vlgmr.msra.gmra.mxu2 %v559_v52  ;;  %692 = vmatmul.f32.vlgmr.msra.gmra.mxu0 %v559_v52  ;;  %v501_v59 = vmax.f32 %v498_v53, 0.0 }
 0x1af   :  { %762 = vmatpush.msra.mxu1 %v586_v55 }
 0x1b0   :  { %v510_v60 = vmul.f32 %v507_v36, %v503_v56  ;;  %735 = vmatmul.f32.vlgmr.msrb.gmra.mxu3 %v511_v57 }
 0x1b1   :  { %763 = vmatpush.msra.mxu1 %v584_v58 }
 0x1b2   :  { %v512_v62 = vadd.f32 %v510_v60, %v501_v59 }
 0x1b3   :  { %764 = vmatpush.msra.mxu1 %v582_v61 }
 0x1b4   :  { %885 = vmatmul.msk.f32.vlgmr.msrb.gmra.mxu1 %vm102_vm0, %v512_v62 }
 0x1b5   :  { %765 = vmatpush.msra.mxu1 %v580_v63 }
 0x1b6   :  { %886 = vmatmul.msk.f32.vlgmr.msrb.gmra.mxu2 %vm102_vm0, %v512_v62 }
 0x1b7   :  { %766 = vmatpush.msra.mxu1 %v578_v0 }
 0x1b9   :  { %767 = vmatpush.msra.mxu1 %v576_v1 }
 0x1bb   :  { %768 = vmatpush.msra.mxu1 %v574_v2 }
 0x1bd   :  { %769 = vmatpush.msra.mxu1 %v572_v3 }
 0x1bf   :  { %770 = vmatpush.msra.mxu1 %v570_v4 }
 0x1c1   :  { %771 = vmatpush.msra.mxu1 %v568_v5 }
 0x1c3   :  { %772 = vmatpush.msra.mxu1 %v566_v6 }
 0x1c5   :  { %773 = vmatpush.msra.mxu1 %v564_v7 }
 0x1c7   :  { %774 = vmatpush.msra.mxu1 %v562_v8 }
 0x1c8   :  { %775 = vmatmul.f32.vlgmr.msra.gmra.mxu1 %v511_v57 }
 0x225   :  { %v713_v10 = vpop.f32.mrf.mxu1 }
 0x22b   :  { %v673_v9 = vpop.f32.mrf.mxu3  ;;  %v693_v24 = vpop.f32.mrf.mxu0 }
 0x231   :  { %v653_v11 = vpop.f32.mrf.mxu2  ;;  %v756_v15 = vpop.f32.mrf.mxu1 }
 0x232   :  { %v674_v12 = vadd.f32 %v673_v9, %v653_v11 }
 0x233   :  { %v736_v13 = vpop.f32.mrf.mxu3 }
 0x234   :  { %v737_v14 = vadd.f32 %v736_v13, %v674_v12 }
 0x236   :  { %v757_v17 = vadd.f32 %v756_v15, %v737_v14 }
 0x238   :  { %v799_v18 = vadd.f32 %v757_v17, %v1084_v20  ;;  %v714_v20 = vadd.f32 %v713_v10, %v693_v24 }
 0x239   :  { %v796_v27 = vpop.f32.mrf.mxu2 }
 0x23a   :  { %836 = vmatpush.msrb.mxu0 %v799_v18 }
 0x23b   :  { %887 = vmatmul.msk.f32.vlgmr.msrb.gmra.mxu0 %vm456_vm1, %v801_v19 }
 0x243   :  { %888 = vmatmul.msk.f32.gmra.mxu0 %vm456_vm1, %v802_v23 }
 0x245   :  { %v776_v25 = vpop.f32.mrf.mxu1 }
 0x246   :  { %v777_v26 = vadd.f32 %v776_v25, %v714_v20 }
 0x248   :  { %v797_v28 = vadd.f32 %v796_v27, %v777_v26 }
 0x24a   :  { %v800_v29 = vadd.f32 %v797_v28, %v1086_v21 }
 0x24c   :  { %859 = vmatpush.msra.mxu2 %v800_v29 }
 0x24d   :  { %889 = vmatmul.msk.f32.vlgmr.msra.gmra.mxu2 %vm456_vm1, %v801_v19 }
 0x255   :  { %890 = vmatmul.msk.f32.gmra.mxu2 %vm456_vm1, %v802_v23 }
 0x2b8   :  { %v838_v31 = vpop.f32.mrf.mxu0 }
 0x2b9   :  { %v839_v32 = vadd.f32 %v838_v31, %v808_v30 }
 0x2bb   :  { %867 = vst [vmem:[%s1264_s13] sm:$0xff] %v839_v32 }
 0x2c0   :  { %v841_v34 = vpop.f32.mrf.mxu0 }
 0x2c1   :  { %v842_v35 = vadd.f32 %v841_v34, %v813_v33 }
 0x2c3   :  { %869 = vst [vmem:[%s1264_s13 + $0x10] sm:$0xff] %v842_v35 }
 0x2d0   :  { %v861_v21 = vpop.f32.mrf.mxu2 }
 0x2d1   :  { %v862_v36 = vadd.f32 %v861_v21, %v808_v30 }
 0x2d3   :  { %868 = vst [vmem:[%s1264_s13 + $0x8] sm:$0xff] %v862_v36 }
 0x2d8   :  { %v864_v37 = vpop.f32.mrf.mxu2 }
 0x2d9   :  { %v865_v38 = vadd.f32 %v864_v37, %v813_v33 }
 0x2db   :  { %870 = vst [vmem:[%s1264_s13 + $0x18] sm:$0xff] %v865_v38 }
 0x2dc   :  { %875 = vsyncpa [#allocation3], 1 }
 0x2dd   :  { %876 = vsyncpa [#allocation5], 1 }

</bundles_post_ra>
